<compile_context>
chip_gen: v6e
topology: v6e:2x2x1
jax: 0.10.0
libtpu: 0.0.40
codegen_flags: <defaults>
</compile_context>

<pallas_src>
import jax
import jax.numpy as jnp
from jax.experimental import pallas as pl
from jax.experimental.pallas import tpu as pltpu


def net_kernel(k_ref, o_ref):
    # Scalar-unit hot path: ret = (k + 1) / (k * 5 + 3).
    k = k_ref[0]
    o_ref[0] = (k + 1.0) / (k * 5.0 + 3.0)


def net_forward(k):
    """Standalone Pallas custom call. k: (1,) float32 parameter."""
    return pl.pallas_call(
        net_kernel,
        out_shape=jax.ShapeDtypeStruct((1,), jnp.float32),
        # 1-D SMEM scalars — minimal footprint, no grid, no VMEM tiling.
        in_specs=[pl.BlockSpec(memory_space=pltpu.SMEM)],
        out_specs=pl.BlockSpec(memory_space=pltpu.SMEM),
        # 3 flops, 0 transcendentals, 4B in + 4B out: tell XLA this call is free.
        cost_estimate=pl.CostEstimate(flops=3, transcendentals=0, bytes_accessed=8),
    )(k)


def net_forward_fused(k):
    """Recommended default entry point: plain jnp ops that XLA fuses or
    constant-folds into the consumer, eliminating the custom-call dispatch and
    the HBM round-trip for the 4-byte result."""
    return (k + 1.0) / (k * 5.0 + 3.0)


if __name__ == "__main__":
    # Deterministic parameter init, matching nn.Parameter(torch.tensor(1.0, ...)).
    _ = jax.random.PRNGKey(0)  # the module takes no random inputs
    k = jnp.array([1.0], dtype=jnp.float32)

    out = net_forward(k)
    out = jax.block_until_ready(out)

    expected = (1.0 + 1.0) / (1.0 * 5.0 + 3.0)  # = 0.25
    assert out.shape == (1,)
    assert abs(float(out[0]) - expected) < 1e-6, (float(out[0]), expected)

    # Fused (no-custom-call) path agrees with the kernel path.
    out_fused = jax.block_until_ready(jax.jit(net_forward_fused)(k))
    assert abs(float(out_fused[0]) - expected) < 1e-6

    print("KERNEL_OK")
</pallas_src>

<mosaic_0001>
module attributes {stable_mosaic.version = 11 : i64} {
  func.func @net_kernel(%arg0: memref<1xf32, #tpu.memory_space<smem>>, %arg1: memref<1xf32, #tpu.memory_space<smem>>) attributes {dimension_semantics = [], scalar_prefetch = 0 : i64, scratch_operands = 0 : i64, tpu.core_type = #tpu.core_type<tc>} {
    %c0 = arith.constant 0 : index
    %0 = memref.load %arg0[%c0] : memref<1xf32, #tpu.memory_space<smem>>
    %cst = arith.constant 1.000000e+00 : f32
    %1 = arith.addf %0, %cst : f32
    %cst_0 = arith.constant 5.000000e+00 : f32
    %2 = arith.mulf %0, %cst_0 : f32
    %cst_1 = arith.constant 3.000000e+00 : f32
    %3 = arith.addf %2, %cst_1 : f32
    %4 = arith.divf %1, %3 : f32
    %c0_2 = arith.constant 0 : index
    %5 = memref.load %arg1[%c0_2] : memref<1xf32, #tpu.memory_space<smem>>
    memref.store %4, %arg1[%c0_2] : memref<1xf32, #tpu.memory_space<smem>>
    return
  }
}

</mosaic_0001>

<bundles_post_ra>
// kernel: tpu_custom_call.1
= control target key start
LH: loop header
LB: loop body
LE: loop exit
PB: predicated region body
PF: predicated region fallthrough
CT: control target
= control target key end

     0   :  { %s68_s0 = inlined_call_operand.<no memory space> [shape: f32[1], index: 0, kind: input, shape index: {}]   ;;  %s69_s1 = inlined_call_operand.hbm [shape: f32[1], index: 1, kind: output, shape index: {}]  }
   0x1   :  { %s12_s8 = smul.f32 5.0, %s68_s0 }
   0x2   :  { %7 = vsyncpa [#allocation4], 0  ;;  %s11_s12 = sadd.f32 1.0, %s68_s0  ;;  %s48_s15 = smov [#allocation3]  }
   0x3   :  { %s13_s9 = sadd.f32 3.0, %s12_s8 }
   0x5   :  { %v14_v0 = vstv %s13_s9 }
   0x6   :  { %36 = vrcp.f32 %v14_v0 }
  0x13   :  { %v37_v1 = vpop.eup %36 }
  0x14   :  { %33 = vpush %v37_v1 }
  0x45   :  { %s34_s13 = spop %33 }
  0x46   :  { %s17_s14 = smul.f32 %s34_s13, %s11_s12 }
  0x48   :  { %19 = sst [smem:[#allocation3]] %s17_s14 }
  0x49   :  { %27 = dma.smem_to_hbm %s48_s15, 16, %s69_s1, [#allocation4]  }
  0x4a   :  { %46 = dma.done.wait [#allocation4], 16  }
  0x4b   :  { %47 = vsyncadd [#allocation4], 4294967280 }
  0x4c   :  { %31 = sfence }
  0x4d   :  { %32 = vsyncpa [#allocation4], 1 }

</bundles_post_ra>
